<compile_context>
chip_gen: v7x
topology: tpu7x:2x2x1
jax: 0.10.0
libtpu: 0.0.40
codegen_flags: <defaults>
</compile_context>

<pallas_src>
import jax
import jax.numpy as jnp
from jax.experimental import pallas as pl
from jax.experimental.pallas import tpu as pltpu


def _round_up(v, m):
    return ((v + m - 1) // m) * m


def mlp_kernel(x_ref,
               w1_ref, b1_ref,
               w2_ref, b2_ref,
               w3_ref, b3_ref,
               w4_ref, b4_ref,
               w5_ref, b5_ref,
               o_ref):
    # Hoist bias / small-weight loads (JAX does not CSE broadcast_in_dim).
    b1 = b1_ref[...]   # [16, 1]
    b2 = b2_ref[...]   # [32, 1]
    b3 = b3_ref[...]   # [24, 1]
    b4 = b4_ref[...]   # [8, 1]
    w5 = w5_ref[...]   # [8, 1]
    b5 = b5_ref[...]   # [1, 1]

    h = x_ref[...]     # [8, TB]  (batch on lanes)

    def dense(w_ref, hh, b):
        # [out, in] @ [in, TB] -> [out, TB], f32 accumulate on the MXU.
        return jnp.dot(w_ref[...], hh, preferred_element_type=jnp.float32) + b

    h = jnp.maximum(dense(w1_ref, h, b1), 0.0)   # l1 + relu (dropout = identity)
    h = jnp.maximum(dense(w2_ref, h, b2), 0.0)   # l2 + relu
    h = jnp.maximum(dense(w3_ref, h, b3), 0.0)   # l3 + relu
    h = jnp.maximum(dense(w4_ref, h, b4), 0.0)   # l4 + relu   -> [8, TB]

    # l5 (out=1): VPU broadcast-multiply + cheap 8-sublane reduce (XLU slot),
    # avoiding a K=8, N=1 MXU matmul that would cost a full layer of pushes.
    logits = jnp.sum(w5 * h, axis=0, keepdims=True) + b5     # [1, TB]
    o_ref[...] = jax.nn.sigmoid(logits)                      # EUP slot, lane-dense store


def mlp_forward(x, params, *, tb=4096):
    """x: [B, 8] float32.  params: dict name -> (W[out, in], b[out])."""
    x = jnp.asarray(x, jnp.float32)
    B = x.shape[0]

    # ---- batch tile selection (TB must be a multiple of 128: lane axis) ----
    B128 = _round_up(max(B, 1), 128)
    TB = _round_up(min(tb, B128), 128)
    # Keep >= 2 grid tiles when there's enough work so v7x's two TensorCores
    # both participate (the batch axis is the only work-splitting mechanism).
    if B128 // TB < 2 and B128 >= 256:
        TB = _round_up(-(-B128 // 2), 128)
    Bp = _round_up(B, TB)

    # Pad batch (zero rows, sliced off afterwards) and flip to batch-on-lanes.
    if Bp != B:
        x = jnp.pad(x, ((0, Bp - B), (0, 0)))
    x_t = x.T                                                   # [8, Bp]

    # Glue: weights kept as [out, in]; biases as [out, 1] (broadcast over lanes).
    flat_args = []
    for name in ("l1", "l2", "l3", "l4"):
        W, b = params[name]
        flat_args.append(jnp.asarray(W, jnp.float32))           # [out, in]
        flat_args.append(jnp.asarray(b, jnp.float32)[:, None])  # [out, 1]
    W5, b5 = params["l5"]
    flat_args.append(jnp.asarray(W5, jnp.float32).reshape(8, 1))  # [1,8] -> [8,1]
    flat_args.append(jnp.asarray(b5, jnp.float32).reshape(1, 1))

    # Full-shape blocks + constant index maps -> DMA'd once, stay resident.
    weight_specs = [pl.BlockSpec(a.shape, lambda i: (0, 0)) for a in flat_args]

    out = pl.pallas_call(
        mlp_kernel,
        out_shape=jax.ShapeDtypeStruct((1, Bp), jnp.float32),
        grid=(Bp // TB,),
        in_specs=[pl.BlockSpec((8, TB), lambda i: (0, i))] + weight_specs,
        out_specs=pl.BlockSpec((1, TB), lambda i: (0, i)),
        compiler_params=pltpu.CompilerParams(
            dimension_semantics=("parallel",),   # shard batch tiles across TCs on v7x
        ),
    )(x_t, *flat_args)

    return out[0, :B].reshape(B, 1)


def _reference(x, params):
    """Plain-JAX reference (dropout = identity in eval mode)."""
    h = jnp.asarray(x, jnp.float32)
    for name in ("l1", "l2", "l3", "l4"):
        W, b = params[name]
        h = jnp.maximum(h @ W.T + b, 0.0)
    W5, b5 = params["l5"]
    return jax.nn.sigmoid(h @ W5.T + b5)


def init_params(key):
    """Deterministic PyTorch-Linear-style init (uniform +/- 1/sqrt(fan_in))."""
    dims = [(8, 16), (16, 32), (32, 24), (24, 8), (8, 1)]
    names = ("l1", "l2", "l3", "l4", "l5")
    params = {}
    for name, (fan_in, fan_out) in zip(names, dims):
        key, kw, kb = jax.random.split(key, 3)
        bound = 1.0 / jnp.sqrt(fan_in)
        W = jax.random.uniform(kw, (fan_out, fan_in), jnp.float32, -bound, bound)
        b = jax.random.uniform(kb, (fan_out,), jnp.float32, -bound, bound)
        params[name] = (W, b)
    return params


if __name__ == "__main__":
    key = jax.random.PRNGKey(0)
    key, kx, kx2 = jax.random.split(key, 3)
    params = init_params(key)

    # Small-shape check (single 128-wide tile, padding path).
    B = 16
    x = jax.random.normal(kx, (B, 8), jnp.float32)
    out = jax.block_until_ready(mlp_forward(x, params))
    ref = _reference(x, params)
    assert out.shape == (B, 1), out.shape
    assert jnp.allclose(out, ref, atol=1e-5, rtol=1e-5), "mismatch vs reference (B=16)"

    # Multi-tile check: batch grid + padding (B not a multiple of the tile) +
    # resident-weight index maps, with a non-default tile size.
    B2 = 1000
    x2 = jax.random.normal(kx2, (B2, 8), jnp.float32)
    out2 = jax.block_until_ready(mlp_forward(x2, params, tb=256))
    ref2 = _reference(x2, params)
    assert out2.shape == (B2, 1), out2.shape
    assert jnp.allclose(out2, ref2, atol=1e-5, rtol=1e-5), "mismatch vs reference (B=1000)"

    # Default-tile check: exercises the ">=2 tiles for v7x" split logic.
    out3 = jax.block_until_ready(mlp_forward(x2, params))
    assert jnp.allclose(out3, ref2, atol=1e-5, rtol=1e-5), "mismatch vs reference (default tb)"

    print("KERNEL_OK")
</pallas_src>

<mosaic_0001>
module attributes {stable_mosaic.version = 11 : i64} {
  func.func @mlp_kernel(%arg0: i32, %arg1: memref<8x128xf32, #tpu.memory_space<vmem>>, %arg2: memref<16x8xf32, #tpu.memory_space<vmem>>, %arg3: memref<16x1xf32, #tpu.memory_space<vmem>>, %arg4: memref<32x16xf32, #tpu.memory_space<vmem>>, %arg5: memref<32x1xf32, #tpu.memory_space<vmem>>, %arg6: memref<24x32xf32, #tpu.memory_space<vmem>>, %arg7: memref<24x1xf32, #tpu.memory_space<vmem>>, %arg8: memref<8x24xf32, #tpu.memory_space<vmem>>, %arg9: memref<8x1xf32, #tpu.memory_space<vmem>>, %arg10: memref<8x1xf32, #tpu.memory_space<vmem>>, %arg11: memref<1x1xf32, #tpu.memory_space<vmem>>, %arg12: memref<1x128xf32, #tpu.memory_space<vmem>>) attributes {dimension_semantics = [#tpu.dimension_semantics<parallel>], iteration_bounds = array<i64: 1>, scalar_prefetch = 0 : i64, scratch_operands = 0 : i64, tpu.core_type = #tpu.core_type<tc>, window_params = [{transform_indices = @transform_0, window_bounds = array<i64: 8, 128>}, {pipeline_mode = #tpu.pipeline_mode<synchronous>, transform_indices = @transform_1, window_bounds = array<i64: 16, 8>}, {pipeline_mode = #tpu.pipeline_mode<synchronous>, transform_indices = @transform_2, window_bounds = array<i64: 16, 1>}, {pipeline_mode = #tpu.pipeline_mode<synchronous>, transform_indices = @transform_3, window_bounds = array<i64: 32, 16>}, {pipeline_mode = #tpu.pipeline_mode<synchronous>, transform_indices = @transform_4, window_bounds = array<i64: 32, 1>}, {pipeline_mode = #tpu.pipeline_mode<synchronous>, transform_indices = @transform_5, window_bounds = array<i64: 24, 32>}, {pipeline_mode = #tpu.pipeline_mode<synchronous>, transform_indices = @transform_6, window_bounds = array<i64: 24, 1>}, {pipeline_mode = #tpu.pipeline_mode<synchronous>, transform_indices = @transform_7, window_bounds = array<i64: 8, 24>}, {pipeline_mode = #tpu.pipeline_mode<synchronous>, transform_indices = @transform_8, window_bounds = array<i64: 8, 1>}, {pipeline_mode = #tpu.pipeline_mode<synchronous>, transform_indices = @transform_9, window_bounds = array<i64: 8, 1>}, {pipeline_mode = #tpu.pipeline_mode<synchronous>, transform_indices = @transform_10, window_bounds = array<i64: 1, 1>}, {transform_indices = @transform_11, window_bounds = array<i64: 1, 128>}]} {
    %c0 = arith.constant 0 : index
    %c0_0 = arith.constant 0 : index
    %0 = vector.load %arg3[%c0, %c0_0] : memref<16x1xf32, #tpu.memory_space<vmem>>, vector<16x1xf32>
    %c0_1 = arith.constant 0 : index
    %c0_2 = arith.constant 0 : index
    %1 = vector.load %arg5[%c0_1, %c0_2] : memref<32x1xf32, #tpu.memory_space<vmem>>, vector<32x1xf32>
    %c0_3 = arith.constant 0 : index
    %c0_4 = arith.constant 0 : index
    %2 = vector.load %arg7[%c0_3, %c0_4] : memref<24x1xf32, #tpu.memory_space<vmem>>, vector<24x1xf32>
    %c0_5 = arith.constant 0 : index
    %c0_6 = arith.constant 0 : index
    %3 = vector.load %arg9[%c0_5, %c0_6] : memref<8x1xf32, #tpu.memory_space<vmem>>, vector<8x1xf32>
    %c0_7 = arith.constant 0 : index
    %c0_8 = arith.constant 0 : index
    %4 = vector.load %arg10[%c0_7, %c0_8] : memref<8x1xf32, #tpu.memory_space<vmem>>, vector<8x1xf32>
    %c0_9 = arith.constant 0 : index
    %c0_10 = arith.constant 0 : index
    %5 = vector.load %arg11[%c0_9, %c0_10] : memref<1x1xf32, #tpu.memory_space<vmem>>, vector<1x1xf32>
    %c0_11 = arith.constant 0 : index
    %c0_12 = arith.constant 0 : index
    %6 = vector.load %arg1[%c0_11, %c0_12] : memref<8x128xf32, #tpu.memory_space<vmem>>, vector<8x128xf32>
    %c0_13 = arith.constant 0 : index
    %c0_14 = arith.constant 0 : index
    %7 = vector.load %arg2[%c0_13, %c0_14] : memref<16x8xf32, #tpu.memory_space<vmem>>, vector<16x8xf32>
    %cst = arith.constant dense<0.000000e+00> : vector<16x128xf32>
    %8 = tpu.matmul %7, %6, %cst {dimension_numbers = #tpu.dot_dimension_numbers<[1], [0], [0], [1], [0, 0, 1, 1], [], []>} : vector<16x8xf32>, vector<8x128xf32>, vector<16x128xf32> -> vector<16x128xf32>
    %9 = vector.broadcast %0 : vector<16x1xf32> to vector<16x128xf32>
    %10 = arith.addf %8, %9 : vector<16x128xf32>
    %cst_15 = arith.constant 0.000000e+00 : f32
    %11 = vector.broadcast %cst_15 : f32 to vector<16x128xf32>
    %12 = arith.maximumf %10, %11 : vector<16x128xf32>
    %c0_16 = arith.constant 0 : index
    %c0_17 = arith.constant 0 : index
    %13 = vector.load %arg4[%c0_16, %c0_17] : memref<32x16xf32, #tpu.memory_space<vmem>>, vector<32x16xf32>
    %cst_18 = arith.constant dense<0.000000e+00> : vector<32x128xf32>
    %14 = tpu.matmul %13, %12, %cst_18 {dimension_numbers = #tpu.dot_dimension_numbers<[1], [0], [0], [1], [0, 0, 1, 1], [], []>} : vector<32x16xf32>, vector<16x128xf32>, vector<32x128xf32> -> vector<32x128xf32>
    %15 = vector.broadcast %1 : vector<32x1xf32> to vector<32x128xf32>
    %16 = arith.addf %14, %15 : vector<32x128xf32>
    %cst_19 = arith.constant 0.000000e+00 : f32
    %17 = vector.broadcast %cst_19 : f32 to vector<32x128xf32>
    %18 = arith.maximumf %16, %17 : vector<32x128xf32>
    %c0_20 = arith.constant 0 : index
    %c0_21 = arith.constant 0 : index
    %19 = vector.load %arg6[%c0_20, %c0_21] : memref<24x32xf32, #tpu.memory_space<vmem>>, vector<24x32xf32>
    %cst_22 = arith.constant dense<0.000000e+00> : vector<24x128xf32>
    %20 = tpu.matmul %19, %18, %cst_22 {dimension_numbers = #tpu.dot_dimension_numbers<[1], [0], [0], [1], [0, 0, 1, 1], [], []>} : vector<24x32xf32>, vector<32x128xf32>, vector<24x128xf32> -> vector<24x128xf32>
    %21 = vector.broadcast %2 : vector<24x1xf32> to vector<24x128xf32>
    %22 = arith.addf %20, %21 : vector<24x128xf32>
    %cst_23 = arith.constant 0.000000e+00 : f32
    %23 = vector.broadcast %cst_23 : f32 to vector<24x128xf32>
    %24 = arith.maximumf %22, %23 : vector<24x128xf32>
    %c0_24 = arith.constant 0 : index
    %c0_25 = arith.constant 0 : index
    %25 = vector.load %arg8[%c0_24, %c0_25] : memref<8x24xf32, #tpu.memory_space<vmem>>, vector<8x24xf32>
    %cst_26 = arith.constant dense<0.000000e+00> : vector<8x128xf32>
    %26 = tpu.matmul %25, %24, %cst_26 {dimension_numbers = #tpu.dot_dimension_numbers<[1], [0], [0], [1], [0, 0, 1, 1], [], []>} : vector<8x24xf32>, vector<24x128xf32>, vector<8x128xf32> -> vector<8x128xf32>
    %27 = vector.broadcast %3 : vector<8x1xf32> to vector<8x128xf32>
    %28 = arith.addf %26, %27 : vector<8x128xf32>
    %cst_27 = arith.constant 0.000000e+00 : f32
    %29 = vector.broadcast %cst_27 : f32 to vector<8x128xf32>
    %30 = arith.maximumf %28, %29 : vector<8x128xf32>
    %31 = vector.broadcast %4 : vector<8x1xf32> to vector<8x128xf32>
    %32 = arith.mulf %31, %30 : vector<8x128xf32>
    %cst_28 = arith.constant dense<0.000000e+00> : vector<128xf32>
    %33 = vector.multi_reduction <add>, %32, %cst_28 [0] : vector<8x128xf32> to vector<128xf32>
    %34 = vector.shape_cast %33 : vector<128xf32> to vector<1x128xf32>
    %35 = vector.broadcast %5 : vector<1x1xf32> to vector<1x128xf32>
    %36 = arith.addf %34, %35 : vector<1x128xf32>
    %37 = arith.negf %36 : vector<1x128xf32>
    %38 = math.exp %37 : vector<1x128xf32>
    %cst_29 = arith.constant 1.000000e+00 : f32
    %39 = vector.broadcast %cst_29 : f32 to vector<1x128xf32>
    %40 = arith.addf %39, %38 : vector<1x128xf32>
    %41 = arith.divf %39, %40 : vector<1x128xf32>
    %c0_30 = arith.constant 0 : index
    %c0_31 = arith.constant 0 : index
    %42 = vector.load %arg12[%c0_30, %c0_31] : memref<1x128xf32, #tpu.memory_space<vmem>>, vector<1x128xf32>
    tpu.vector_store %arg12[%c0_30, %c0_31], %41 {strides = array<i32>} : memref<1x128xf32, #tpu.memory_space<vmem>>, vector<1x128xf32>,
    return
  }
  func.func @transform_0(%arg0: i32) -> (i32, i32) {
    %c0_i32 = arith.constant 0 : i32
    %c0_i32_0 = arith.constant 0 : i32
    return %c0_i32, %arg0 : i32, i32
  }
  func.func @transform_1(%arg0: i32) -> (i32, i32) {
    %c0_i32 = arith.constant 0 : i32
    %c0_i32_0 = arith.constant 0 : i32
    %c0_i32_1 = arith.constant 0 : i32
    return %c0_i32, %c0_i32_0 : i32, i32
  }
  func.func @transform_2(%arg0: i32) -> (i32, i32) {
    %c0_i32 = arith.constant 0 : i32
    %c0_i32_0 = arith.constant 0 : i32
    %c0_i32_1 = arith.constant 0 : i32
    return %c0_i32, %c0_i32_0 : i32, i32
  }
  func.func @transform_3(%arg0: i32) -> (i32, i32) {
    %c0_i32 = arith.constant 0 : i32
    %c0_i32_0 = arith.constant 0 : i32
    %c0_i32_1 = arith.constant 0 : i32
    return %c0_i32, %c0_i32_0 : i32, i32
  }
  func.func @transform_4(%arg0: i32) -> (i32, i32) {
    %c0_i32 = arith.constant 0 : i32
    %c0_i32_0 = arith.constant 0 : i32
    %c0_i32_1 = arith.constant 0 : i32
    return %c0_i32, %c0_i32_0 : i32, i32
  }
  func.func @transform_5(%arg0: i32) -> (i32, i32) {
    %c0_i32 = arith.constant 0 : i32
    %c0_i32_0 = arith.constant 0 : i32
    %c0_i32_1 = arith.constant 0 : i32
    return %c0_i32, %c0_i32_0 : i32, i32
  }
  func.func @transform_6(%arg0: i32) -> (i32, i32) {
    %c0_i32 = arith.constant 0 : i32
    %c0_i32_0 = arith.constant 0 : i32
    %c0_i32_1 = arith.constant 0 : i32
    return %c0_i32, %c0_i32_0 : i32, i32
  }
  func.func @transform_7(%arg0: i32) -> (i32, i32) {
    %c0_i32 = arith.constant 0 : i32
    %c0_i32_0 = arith.constant 0 : i32
    %c0_i32_1 = arith.constant 0 : i32
    return %c0_i32, %c0_i32_0 : i32, i32
  }
  func.func @transform_8(%arg0: i32) -> (i32, i32) {
    %c0_i32 = arith.constant 0 : i32
    %c0_i32_0 = arith.constant 0 : i32
    %c0_i32_1 = arith.constant 0 : i32
    return %c0_i32, %c0_i32_0 : i32, i32
  }
  func.func @transform_9(%arg0: i32) -> (i32, i32) {
    %c0_i32 = arith.constant 0 : i32
    %c0_i32_0 = arith.constant 0 : i32
    %c0_i32_1 = arith.constant 0 : i32
    return %c0_i32, %c0_i32_0 : i32, i32
  }
  func.func @transform_10(%arg0: i32) -> (i32, i32) {
    %c0_i32 = arith.constant 0 : i32
    %c0_i32_0 = arith.constant 0 : i32
    %c0_i32_1 = arith.constant 0 : i32
    return %c0_i32, %c0_i32_0 : i32, i32
  }
  func.func @transform_11(%arg0: i32) -> (i32, i32) {
    %c0_i32 = arith.constant 0 : i32
    %c0_i32_0 = arith.constant 0 : i32
    return %c0_i32, %arg0 : i32, i32
  }
}

</mosaic_0001>

<bundles_post_ra>
// kernel: tpu_custom_call.1
= control target key start
LH: loop header
LB: loop body
LE: loop exit
PB: predicated region body
PF: predicated region fallthrough
CT: control target
= control target key end

     0   :  { %s785_s0 = inlined_call_operand.vmem [shape: f32[8,128], index: 0, kind: input, shape index: {}]   ;;  %s786_s1 = inlined_call_operand.vmem [shape: f32[16,8], index: 1, kind: input, shape index: {}]   ;;  %s787_s2 = inlined_call_operand.vmem [shape: f32[16,1], index: 2, kind: input, shape index: {}]   ;;  %s788_s3 = inlined_call_operand.vmem [shape: f32[32,16], index: 3, kind: input, shape index: {}]   ;;  %s789_s4 = inlined_call_operand.vmem [shape: f32[32,1], index: 4, kind: input, shape index: {}]   ;;  %s790_s5 = inlined_call_operand.vmem [shape: f32[24,32], index: 5, kind: input, shape index: {}]   ;;  %s791_s6 = inlined_call_operand.vmem [shape: f32[24,1], index: 6, kind: input, shape index: {}]   ;;  %s792_s7 = inlined_call_operand.vmem [shape: f32[8,24], index: 7, kind: input, shape index: {}]   ;;  %s793_s8 = inlined_call_operand.vmem [shape: f32[8,1], index: 8, kind: input, shape index: {}]   ;;  %s794_s9 = inlined_call_operand.vmem [shape: f32[8,1], index: 9, kind: input, shape index: {}]   ;;  %s795_s10 = inlined_call_operand.<no memory space> [shape: f32[1,1], index: 10, kind: input, shape index: {}]   ;;  %s796_s11 = inlined_call_operand.hbm [shape: f32[1,128], index: 11, kind: output, shape index: {}]  }
   0x1   :  { %v16_v0 = vstv %s795_s10 }
   0x2   :  { %17 = vst [vmem:[#allocation2] sm:$0x1] %v16_v0 }
   0x3   :  { %v53_v1 = vld [vmem:[%s785_s0] sm:$0xff]  ;;  %vm66_vm0 = vcmask 64512   ;;  %v55_v3 = vld [vmem:[%s786_s1 + $0x8] sm:$0xff]  ;;  %v631_v5 = vmov 0  }
   0x4   :  { %v54_v2 = vld [vmem:[%s786_s1] sm:$0xff]  ;;  %542 = vmatprep.subr.mxu1 %v53_v1  ;;  %601 = vset.pattern.permute.xlu0 %v631_v5 }
   0x5   :  { %544 = vmatprep.mubr.msk.f32.mxu1 %vm66_vm0, %v54_v2  ;;  %v41_v4 = vld [vmem:[%s787_s2] sm:$0xff]  ;;  %543 = vmatpush3.msra.mxu1 %v53_v1 }
   0x6   :  { %545 = vmatmul.mubr.msk.f32.vlgmr.msra.gmra.mrb[0].mxu1 %vm66_vm0, %v55_v3  ;;  %58 = vperm.xlu0 %601, %v41_v4  }
   0x7   :  { %18 = vsyncpa [#allocation4], 0  ;;  %v42_v6 = vld [vmem:[%s787_s2 + $0x8] sm:$0xff]  ;;  %602 = vset.pattern.permute.xlu1 %v631_v5  ;;  %v45_v7 = vld [vmem:[%s789_s4 + $0x10] sm:$0xff]  ;;  %vm174_vm1 = vcmask 130048   ;;  %v632_v30 = vmov 0.0|0.0  }
   0x8   :  { %v47_v8 = vld [vmem:[%s791_s6] sm:$0xff]  ;;  %v49_v9 = vld [vmem:[%s791_s6 + $0x10] sm:$0xff]  ;;  %v44_v13 = vld [vmem:[%s789_s4 + $0x8] sm:$0xff]  ;;  %587 = vmatprep.subr.bf16.mxu0 %v632_v30  ;;  %vm633_vm2 = vmmov 0   ;;  %v634_v31 = vmov 0.0   ;;  %vm294_vm3 = vcmask 261120  }
   0x9   :  { %v51_v10 = vld [vmem:[%s794_s9] sm:$0xff]  ;;  %v46_v14 = vld [vmem:[%s789_s4 + $0x18] sm:$0xff]  ;;  %v48_v15 = vld [vmem:[%s791_s6 + $0x8] sm:$0xff]  ;;  %565 = vmatprep.mubr.msk.f32.mxu0 %vm633_vm2, %v634_v31  ;;  %vm393_vm4 = vcmask 195584  }
   0xa   :  { %63 = vperm.xlu0 %601, %v42_v6   ;;  %v150_v11 = vld [vmem:[%s788_s3] sm:$0xff]  ;;  %v151_v27 = vld [vmem:[%s788_s3 + $0x8] sm:$0xff]  ;;  %v152_v28 = vld [vmem:[%s788_s3 + $0x10] sm:$0xff] }
   0xb   :  { %551 = vmatprep.mubr.msk.f32.mxu1 %vm174_vm1, %v150_v11  ;;  %v43_v12 = vld [vmem:[%s789_s4] sm:$0xff]  ;;  %v153_v29 = vld [vmem:[%s788_s3 + $0x18] sm:$0xff]  ;;  %v277_v51 = vld [vmem:[%s790_s5 + $0x8] sm:$0xff] }
   0xc   :  { %156 = vperm.xlu1 %602, %v43_v12   ;;  %v50_v16 = vld [vmem:[%s793_s8] sm:$0xff]  ;;  %v278_v52 = vld [vmem:[%s790_s5 + $0x10] sm:$0xff]  ;;  %v485_v12 = vlaneseq }
   0xd   :  { %v52_v17 = vld [vmem:[#allocation2] sm:$0x1] }
   0xe   :  { %166 = vperm.xlu0 %601, %v45_v7   ;;  %v276_v50 = vld [vmem:[%s790_s5] sm:$0xff] }
   0xf   :  { %v387_v5 = vld [vmem:[%s792_s7] sm:$0xff]  ;;  %s635_s7 = smov [#allocation3]  }
  0x10   :  { %161 = vperm.xlu1 %602, %v44_v13   ;;  %s503_s12 = sshll.u32 %s635_s7, 4  ;;  %s504_s12 = int_to_ptr.vmem [resolvable:$true] %s503_s12 }
  0x11   :  { %s607_s13 = scalar_lea.vmem %s504_s12, 16  ;;  %s611_s14 = scalar_lea.vmem %s504_s12, 32 }
  0x12   :  { %281 = vperm.xlu0 %601, %v47_v8   ;;  %p608_p0 = scmp.ne.s32.totalorder %s504_s12, %s607_s13  ;;  %p612_p1 = scmp.lt.s32.totalorder %s504_s12, %s504_s12 }
  0x13   :  { %p613_p2 = scmp.lt.s32.totalorder %s611_s14, %s607_s13 }
  0x14   :  { %171 = vperm.xlu1 %602, %v46_v14  }
  0x15   :  { %p614_p3 = por %p613_p2, %p612_p1 }
  0x16   :  { %291 = vperm.xlu0 %601, %v49_v9  }
  0x17   :  { %p615_p4 = pnand %p614_p3, %p608_p0 }
  0x18   :  { %286 = vperm.xlu1 %602, %v48_v15   ;;  %v486_v15 = vshrl.u32 %v485_v12, 7 }
  0x1a   :  { %470 = vperm.xlu0 %601, %v51_v10  }
  0x1c   :  { %390 = vperm.xlu1 %602, %v50_v16  }
  0x20   :  { %482 = vperm.xlu1 %602, %v52_v17  }
  0x85   :  { %v59_v18 = vpop.permute.xlu0 %58 }
  0x89   :  { %v64_v19 = vpop.permute.xlu0 %63 }
  0x8b   :  { %v157_v32 = vpop.permute.xlu1 %156 }
  0x8d   :  { %v167_v42 = vpop.permute.xlu0 %166 }
  0x8f   :  { %v162_v33 = vpop.permute.xlu1 %161 }
  0x91   :  { %v282_v55 = vpop.permute.xlu0 %281 }
  0x93   :  { %v172_v39 = vpop.permute.xlu1 %171 }
  0x95   :  { %v292_v63 = vpop.permute.xlu0 %291 }
  0x97   :  { %v287_v57 = vpop.permute.xlu1 %286 }
  0x99   :  { %v471_v11 = vpop.permute.xlu0 %470 }
  0x9b   :  { %v391_v6 = vpop.permute.xlu1 %390 }
  0xd9   :  { %v546_v20 = vpop.f32.mrb[0].mxu1 }
  0xda   :  { %v145_v21 = vadd.f32 %v546_v20, %v64_v19  ;;  %v139_v22 = vpop.f32.mrb[1].mxu1  ;;  %v483_v20 = vpop.permute.xlu1 %482 }
  0xdb   :  { %v140_v23 = vadd.f32 %v139_v22, %v59_v18  ;;  %v487_v18 = vsub.s32 0, %v486_v15 }
  0xdc   :  { %v149_v24 = vmax.f32 %v145_v21, 0.0 }
  0xdd   :  { %v148_v25 = vmax.f32 %v140_v23, 0.0  ;;  %v488_v22 = vrot.slane %v483_v20, %v487_v18 }
  0xdf   :  { %v583_v26 = vpack.c.bf16 %v149_v24, %v148_v25 }
  0xe1   :  { %584 = vmatprep.subr.bf16.mxu1 %v583_v26 }
  0xe2   :  { %586 = vmatpush3.bf16.msra.mxu1 %v583_v26 }
  0xe3   :  { %593 = vmatprep.subr.bf16.mxu1 %v632_v30 }
  0xe5   :  { %552 = vmatmul.mubr.msk.f32.vlgmr.msra.gmra.mrb[2].mxu1 %vm174_vm1, %v151_v27 }
  0xe6   :  { %554 = vmatprep.mubr.msk.f32.mxu1 %vm174_vm1, %v152_v28 }
  0xe9   :  { %555 = vmatmul.mubr.msk.f32.gmra.mrb[4].mxu1 %vm174_vm1, %v153_v29 }
  0xea   :  { %580 = vmatprep.mubr.msk.f32.mxu1 %vm633_vm2, %v634_v31 }
 0x1b8   :  { %v553_v34 = vpop.f32.mrb[2].mxu1 }
 0x1b9   :  { %v259_v35 = vadd.f32 %v553_v34, %v162_v33  ;;  %v253_v36 = vpop.f32.mrb[3].mxu1 }
 0x1ba   :  { %v254_v37 = vadd.f32 %v253_v36, %v157_v32 }
 0x1bb   :  { %v273_v38 = vmax.f32 %v259_v35, 0.0 }
 0x1bc   :  { %v272_v40 = vmax.f32 %v254_v37, 0.0  ;;  %v556_v41 = vpop.f32.mrb[4].mxu1 }
 0x1bd   :  { %v269_v43 = vadd.f32 %v556_v41, %v172_v39  ;;  %v263_v44 = vpop.f32.mrb[5].mxu1 }
 0x1be   :  { %v264_v45 = vadd.f32 %v263_v44, %v167_v42  ;;  %v588_v46 = vpack.c.bf16 %v273_v38, %v272_v40 }
 0x1bf   :  { %v275_v47 = vmax.f32 %v269_v43, 0.0 }
 0x1c0   :  { %v274_v48 = vmax.f32 %v264_v45, 0.0  ;;  %589 = vmatpush3.bf16.msra.mxu0 %v588_v46 }
 0x1c1   :  { %590 = vmatprep.subr.bf16.mxu0 %v632_v30 }
 0x1c2   :  { %v591_v49 = vpack.c.bf16 %v275_v47, %v274_v48 }
 0x1c4   :  { %592 = vmatpush3.bf16.msra.mxu0 %v591_v49 }
 0x1c7   :  { %566 = vmatmul.mubr.msk.f32.vlgmr.msra.gmra.mrb[0].mxu0 %vm294_vm3, %v276_v50 }
 0x1c8   :  { %568 = vmatprep.mubr.msk.f32.mxu0 %vm633_vm2, %v634_v31 }
 0x1cb   :  { %569 = vmatmul.mubr.msk.f32.gmra.mrb[2].mxu0 %vm294_vm3, %v277_v51 }
 0x1cc   :  { %571 = vmatprep.mubr.msk.f32.mxu0 %vm633_vm2, %v634_v31 }
 0x1cf   :  { %572 = vmatmul.mubr.msk.f32.gmra.mrb[4].mxu0 %vm294_vm3, %v278_v52 }
 0x29a   :  { %v370_v53 = vpop.f32.mrb[0].mxu0 }
 0x29b   :  { %v567_v54 = vpop.f32.mrb[1].mxu0  ;;  %v371_v56 = vadd.f32 %v370_v53, %v282_v55 }
 0x29d   :  { %v384_v61 = vmax.f32 %v371_v56, 0.0 }
 0x29e   :  { %v375_v58 = vpop.f32.mrb[2].mxu0 }
 0x29f   :  { %v376_v59 = vadd.f32 %v375_v58, %v287_v57  ;;  %v570_v60 = vpop.f32.mrb[3].mxu0 }
 0x2a1   :  { %v385_v62 = vmax.f32 %v376_v59, 0.0 }
 0x2a2   :  { %v380_v0 = vpop.f32.mrb[4].mxu0 }
 0x2a3   :  { %v594_v1 = vpack.c.bf16 %v385_v62, %v384_v61  ;;  %v381_v2 = vadd.f32 %v380_v0, %v292_v63  ;;  %v573_v3 = vpop.f32.mrb[5].mxu0 }
 0x2a5   :  { %595 = vmatpush3.bf16.msra.mxu1 %v594_v1  ;;  %v386_v4 = vmax.f32 %v381_v2, 0.0 }
 0x2a6   :  { %578 = vmatprep.subr.mxu1 %v634_v31 }
 0x2a9   :  { %579 = vmatpush3.msra.mxu1 %v386_v4 }
 0x2aa   :  { %581 = vmatmul.mubr.msk.f32.vlgmr.msra.gmra.mrb[6].mxu1 %vm393_vm4, %v387_v5 }
 0x37d   :  { %v463_v7 = vpop.f32.mrb[6].mxu1 }
 0x37e   :  { %v464_v8 = vadd.f32 %v463_v7, %v391_v6  ;;  %v582_v9 = vpop.f32.mrb[7].mxu1 }
 0x380   :  { %v467_v10 = vmax.f32 %v464_v8, 0.0 }
 0x382   :  { %v473_v13 = vmul.f32 %v471_v11, %v467_v10 }
 0x384   :  { %v474_v14 = vrot.slane %v473_v13, 4 }
 0x386   :  { %v475_v16 = vadd.f32 %v474_v14, %v473_v13 }
 0x388   :  { %v476_v17 = vrot.slane %v475_v16, 2 }
 0x38a   :  { %v477_v19 = vadd.f32 %v476_v17, %v475_v16 }
 0x38c   :  { %v478_v21 = vrot.slane %v477_v19, 1 }
 0x38e   :  { %v479_v23 = vadd.f32 %v478_v21, %v477_v19 }
 0x390   :  { %v489_v24 = vadd.f32 %v488_v22, %v479_v23 }
 0x392   :  { %v521_v25 = vmul.f32 -1.442695, %v489_v24 }
 0x394   :  { %603 = vpow2.f32 %v521_v25 }
 0x39e   :  { %v604_v26 = vpop.eup %603 }
 0x39f   :  { %v493_v27 = vadd.f32 1.0, %v604_v26 }
 0x3a1   :  { %605 = vrcp.f32 %v493_v27 }
 0x3ab   :  { %v606_v28 = vpop.eup %605 }
 0x3ac   :  { %496 = vst [vmem:[#allocation3] sm:$0x1] %v606_v28 }
 0x3ad   :  { %618 = shalt.err (!%p615_p4)
}
 0x3ae   :  { %s619_s16 = scalar_lea.hbm %s796_s11, 16 }
 0x3af   :  { %p620_p5 = scmp.ne.s32.totalorder %s796_s11, %s619_s16  ;;  %p623_p6 = scmp.lt.u32.totalorder %s619_s16, %s796_s11 }
 0x3b1   :  { %p625_p7 = pnand %p623_p6, %p620_p5 }
 0x3b3   :  { %628 = shalt.err (!%p625_p7)
}
 0x3b4   :  { %506 = dma.vmem_to_hbm [thread:$0]  %s504_s12, 16, %s796_s11, [#allocation4]  }
 0x3b5   :  { %629 = dma.done.wait [#allocation4], 16  }
 0x3b6   :  { %630 = vsyncadd [#allocation4], 4294967280 }
 0x3b7   :  { %510 = vsyncpa [#allocation4], 1 }

</bundles_post_ra>
